<compile_context>
chip_gen: v6e
topology: v6e:2x2x1
jax: 0.10.0
libtpu: 0.0.40
codegen_flags: <defaults>
</compile_context>

<pallas_src>
from typing import Optional

import jax
import jax.numpy as jnp
from jax import lax
from jax.experimental import pallas as pl
from jax.experimental.pallas import tpu as pltpu

LANE = 128


def _round_up(x, m):
    return (x + m - 1) // m * m


def _round_down(x, m):
    return (x // m) * m


def _cdiv(a, b):
    return (a + b - 1) // b


def _make_kernel(*, tr, chunk, rows, steps, needs_mask):
    """Build the partial-sum kernel for static (tr, chunk, rows, steps)."""
    n_chunks = tr // chunk

    def kernel(p_ref, t_ref, acc_ref):
        c = pl.program_id(0)
        i = pl.program_id(1)

        @pl.when(i == 0)
        def _init():
            acc_ref[...] = jnp.zeros_like(acc_ref)

        # Nominal (unclamped) first global row of this block — used only for
        # masking rows that fall past the end of the real data.
        row0 = (c * steps + i) * tr

        def body(j, carry):
            sq, ab = carry
            off = pl.multiple_of(j * chunk, chunk)
            p = p_ref[pl.ds(off, chunk), :].astype(jnp.float32)
            t = t_ref[pl.ds(off, chunk), :].astype(jnp.float32)
            d = p - t
            if needs_mask:
                rid = row0 + off + lax.broadcasted_iota(jnp.int32, (chunk, 1), 0)
                d = jnp.where(rid < rows, d, 0.0)
            # (chunk,128) -> (chunk//8, 8, 128): sum over the vreg-index axis
            # is pure VPU adds; no XLU work in the hot loop.
            sq = sq + jnp.sum((d * d).reshape(chunk // 8, 8, LANE), axis=0)
            ab = ab + jnp.sum(jnp.abs(d).reshape(chunk // 8, 8, LANE), axis=0)
            return sq, ab

        zero = jnp.zeros((8, LANE), jnp.float32)
        sq, ab = lax.fori_loop(0, n_chunks, body, (zero, zero))

        # Output block is the cross-step accumulator (resident across i).
        acc_ref[0, 0, :, :] += sq
        acc_ref[0, 1, :, :] += ab

    return kernel


def _partial_sums(p2, t2, rows, tr, chunk, n_split, core_parallel, vmem_limit):
    """Run the streaming reduction; returns (n_split, 2, 8, 128) partial sums."""
    total_blocks = _cdiv(rows, tr)
    steps = _cdiv(total_blocks, n_split)
    needs_mask = (rows % tr != 0) or (total_blocks % n_split != 0)

    def row_map(c, i):
        # Clamp so any fully past-the-end block (only possible when the blocks
        # don't split evenly across cores) re-reads the last valid block; its
        # contribution is zeroed by the in-kernel mask.
        return (jnp.minimum(c * steps + i, total_blocks - 1), 0)

    kernel = _make_kernel(tr=tr, chunk=chunk, rows=rows, steps=steps,
                          needs_mask=needs_mask)

    if core_parallel:
        semantics = (pltpu.CORE_PARALLEL, pltpu.ARBITRARY)
    else:
        semantics = ("arbitrary", "arbitrary")

    return pl.pallas_call(
        kernel,
        out_shape=jax.ShapeDtypeStruct((n_split, 2, 8, LANE), jnp.float32),
        grid_spec=pltpu.PrefetchScalarGridSpec(
            num_scalar_prefetch=0,
            grid=(n_split, steps),
            in_specs=[
                pl.BlockSpec((tr, LANE), row_map),
                pl.BlockSpec((tr, LANE), row_map),
            ],
            out_specs=pl.BlockSpec((1, 2, 8, LANE), lambda c, i: (c, 0, 0, 0)),
        ),
        compiler_params=pltpu.CompilerParams(
            dimension_semantics=semantics,
            vmem_limit_bytes=vmem_limit,
        ),
    )(p2, t2)


def _device_kind():
    try:
        return jax.devices()[0].device_kind.lower()
    except Exception:
        return ""


def _auto_config(max_itemsize):
    """Generation-aware (row_tile, n_split)."""
    kind = _device_kind()
    if "v7" in kind:
        base, n_split = 8192, 2    # 2 TensorCores/chip; ~3.2 TB/s HBM
    elif "v6" in kind:
        base, n_split = 4096, 1
    else:
        base, n_split = 2048, 1    # v5e / unknown: stay under 16 MiB scoped VMEM
    # Narrower dtypes halve/quarter bytes per row -> stream more rows per tile.
    row_tile = base * max(1, 4 // max_itemsize)
    return row_tile, n_split


def combined_loss(predictions, targets, weights, *, row_tile: Optional[int] = None):
    """Weighted MSE + L1 loss (both reduction='mean').

    Returns (total, indiv) where indiv = [mse, mae] (unweighted), matching the
    PyTorch module's total_loss and the per-loss values it logs.
    """
    assert predictions.shape == targets.shape
    n_elems = predictions.size
    assert n_elems > 0

    itemsize_p = jnp.dtype(predictions.dtype).itemsize
    itemsize_t = jnp.dtype(targets.dtype).itemsize
    max_itemsize = max(itemsize_p, itemsize_t)
    # Sublane granularity must satisfy the *narrowest* dtype's minimum tile.
    sub_req = {4: 8, 2: 16, 1: 32}
    sublane = max(sub_req.get(itemsize_p, 8), sub_req.get(itemsize_t, 8))

    auto_tile, n_split = _auto_config(max_itemsize)
    if row_tile is None:
        row_tile = auto_tile

    rows = _cdiv(n_elems, LANE)
    flat_p = predictions.reshape(-1)
    flat_t = targets.reshape(-1)

    # Pad (a copy) only when unavoidable: ragged last 128-lane row, or fewer
    # than `sublane` rows total.  Pad only to the next sublane multiple; all
    # other raggedness is masked inside the kernel.  Padded elements are zero
    # in BOTH tensors, so their diff contributes exactly 0.
    if (n_elems % LANE != 0) or (rows < sublane):
        pad_rows = max(_round_up(rows, sublane), sublane)
        pad = pad_rows * LANE - n_elems
        flat_p = jnp.pad(flat_p, (0, pad))
        flat_t = jnp.pad(flat_t, (0, pad))
        rows = pad_rows

    p2 = flat_p.reshape(rows, LANE)   # native dtype; reshape of contiguous data
    t2 = flat_t.reshape(rows, LANE)

    # Row tile: multiple of sublane, never larger than the (sublane-aligned)
    # row count so every block starts inside the array.
    tr = min(_round_up(row_tile, sublane), _round_down(rows, sublane))
    tr = max(tr, sublane)

    # Inner chunk of the per-tile accumulation loop (bounds VMEM temporaries).
    if tr % 1024 == 0:
        chunk = 1024
    elif tr % 512 == 0:
        chunk = 512
    else:
        chunk = tr

    # Double-buffered native-dtype inputs + small f32 temporaries + margin.
    vmem_limit = int(min(max(2 * tr * LANE * (itemsize_p + itemsize_t)
                             + 8 * chunk * LANE * 4 + (4 << 20),
                             16 << 20),
                         48 << 20))

    if n_split > 1:
        try:
            partials = _partial_sums(p2, t2, rows, tr, chunk, n_split, True, vmem_limit)
            jax.block_until_ready(partials)
        except Exception:
            # Fall back to the single-core layout if CORE_PARALLEL is rejected.
            partials = _partial_sums(p2, t2, rows, tr, chunk, 1, False, vmem_limit)
    else:
        partials = _partial_sums(p2, t2, rows, tr, chunk, 1, False, vmem_limit)

    # Tiny epilogue in plain JAX: reduce lane-dense partials, divide by the
    # ORIGINAL element count, apply weights.
    sums = jnp.sum(partials, axis=(0, 2, 3))           # [sum_sq, sum_abs]
    indiv = sums * jnp.float32(1.0 / n_elems)           # [mse, mae]
    w = jnp.asarray(weights, jnp.float32)
    total = jnp.sum(w * indiv)
    return total, indiv


def _reference(predictions, targets, weights):
    diff = predictions.astype(jnp.float32) - targets.astype(jnp.float32)
    mse = jnp.mean(diff * diff)
    mae = jnp.mean(jnp.abs(diff))
    w = jnp.asarray(weights, jnp.float32)
    return w[0] * mse + w[1] * mae, jnp.stack([mse, mae])


if __name__ == "__main__":
    key = jax.random.PRNGKey(0)
    kp, kt, kp2, kt2, kp3, kt3 = jax.random.split(key, 6)

    # Deterministic weights: uniform 1/len(losses), the module's default.
    # TODO(synk): adaptive re-weighting (_update_adaptive_weights) is host-side
    # training-time buffer bookkeeping (history EMA, .item() logging), not part
    # of the forward hot path; weights are passed in as a constant array.
    weights = jnp.array([0.5, 0.5], dtype=jnp.float32)

    # NCHW inputs, as the PyTorch module would receive.
    B, C, H, W = 2, 4, 16, 16
    predictions = jax.random.normal(kp, (B, C, H, W), dtype=jnp.float32)
    targets = jax.random.normal(kt, (B, C, H, W), dtype=jnp.float32)
    total, indiv = combined_loss(predictions, targets, weights)
    jax.block_until_ready((total, indiv))
    ref_total, ref_indiv = _reference(predictions, targets, weights)
    assert jnp.allclose(total, ref_total, rtol=1e-5, atol=1e-6)
    assert jnp.allclose(indiv, ref_indiv, rtol=1e-5, atol=1e-6)

    # Odd element count (not a multiple of 128) -> minimal lane pad path.
    p_odd = jax.random.normal(kp2, (3, 5, 17, 13), dtype=jnp.float32)
    t_odd = jax.random.normal(kt2, (3, 5, 17, 13), dtype=jnp.float32)
    total_o, indiv_o = combined_loss(p_odd, t_odd, weights)
    jax.block_until_ready((total_o, indiv_o))
    ref_total_o, ref_indiv_o = _reference(p_odd, t_odd, weights)
    assert jnp.allclose(total_o, ref_total_o, rtol=1e-5, atol=1e-6)
    assert jnp.allclose(indiv_o, ref_indiv_o, rtol=1e-5, atol=1e-6)

    # Multi-block streaming with a ragged trailing block -> in-kernel row mask.
    p_big = jax.random.normal(kp3, (4, 3, 100, 100), dtype=jnp.float32)
    t_big = jax.random.normal(kt3, (4, 3, 100, 100), dtype=jnp.float32)
    total_m, indiv_m = combined_loss(p_big, t_big, weights, row_tile=64)
    jax.block_until_ready((total_m, indiv_m))
    ref_total_m, ref_indiv_m = _reference(p_big, t_big, weights)
    assert jnp.allclose(total_m, ref_total_m, rtol=1e-5, atol=1e-6)
    assert jnp.allclose(indiv_m, ref_indiv_m, rtol=1e-5, atol=1e-6)

    # bf16 inputs -> native-dtype streaming with (16,128) sublane granularity.
    p_bf = p_odd.astype(jnp.bfloat16)
    t_bf = t_odd.astype(jnp.bfloat16)
    total_b, indiv_b = combined_loss(p_bf, t_bf, weights)
    jax.block_until_ready((total_b, indiv_b))
    ref_total_b, ref_indiv_b = _reference(p_bf, t_bf, weights)
    assert jnp.allclose(total_b, ref_total_b, rtol=1e-4, atol=1e-5)
    assert jnp.allclose(indiv_b, ref_indiv_b, rtol=1e-4, atol=1e-5)

    # Mixed dtypes (f32 predictions, bf16 targets) -> widest sublane requirement.
    total_x, indiv_x = combined_loss(predictions, targets.astype(jnp.bfloat16), weights)
    jax.block_until_ready((total_x, indiv_x))
    ref_total_x, ref_indiv_x = _reference(predictions, targets.astype(jnp.bfloat16), weights)
    assert jnp.allclose(total_x, ref_total_x, rtol=1e-4, atol=1e-5)
    assert jnp.allclose(indiv_x, ref_indiv_x, rtol=1e-4, atol=1e-5)

    print("KERNEL_OK")
</pallas_src>

<mosaic_0001>
module attributes {stable_mosaic.version = 11 : i64} {
  func.func @kernel(%arg0: i32, %arg1: i32, %arg2: memref<16x128xf32, #tpu.memory_space<vmem>>, %arg3: memref<16x128xf32, #tpu.memory_space<vmem>>, %arg4: memref<1x2x8x128xf32, #tpu.memory_space<vmem>>) attributes {dimension_semantics = [#tpu.dimension_semantics<arbitrary>, #tpu.dimension_semantics<arbitrary>], iteration_bounds = array<i64: 1, 1>, scalar_prefetch = 0 : i64, scratch_operands = 0 : i64, tpu.core_type = #tpu.core_type<tc>, window_params = [{transform_indices = @transform_0, window_bounds = array<i64: 16, 128>}, {transform_indices = @transform_1, window_bounds = array<i64: 16, 128>}, {transform_indices = @transform_2, window_bounds = array<i64: 1, 2, 8, 128>}]} {
    %c0_i32 = arith.constant 0 : i32
    %0 = arith.cmpi eq, %arg1, %c0_i32 : i32
    %1 = arith.extui %0 : i1 to i32
    %c0_i32_0 = arith.constant 0 : i32
    %2 = arith.cmpi ne, %1, %c0_i32_0 : i32
    scf.if %2 {
      %cst_20 = arith.constant 0.000000e+00 : f32
      %31 = vector.broadcast %cst_20 : f32 to vector<1x2x8x128xf32>
      %c0_21 = arith.constant 0 : index
      %c0_22 = arith.constant 0 : index
      %c0_23 = arith.constant 0 : index
      %c0_24 = arith.constant 0 : index
      %32 = vector.load %arg4[%c0_21, %c0_22, %c0_23, %c0_24] : memref<1x2x8x128xf32, #tpu.memory_space<vmem>>, vector<1x2x8x128xf32>
      tpu.vector_store %arg4[%c0_21, %c0_22, %c0_23, %c0_24], %31 {strides = array<i32>} : memref<1x2x8x128xf32, #tpu.memory_space<vmem>>, vector<1x2x8x128xf32>,
    } else {
    }
    %cst = arith.constant 0.000000e+00 : f32
    %3 = vector.broadcast %cst : f32 to vector<8x128xf32>
    %c0_i32_1 = arith.constant 0 : i32
    %c16_i32 = arith.constant 16 : i32
    %4 = arith.muli %c0_i32_1, %c16_i32 : i32
    %5 = tpu.assume_multiple %4, 16 : i32
    %6 = arith.index_cast %5 : i32 to index
    %c0 = arith.constant 0 : index
    %7 = vector.load %arg2[%6, %c0] : memref<16x128xf32, #tpu.memory_space<vmem>>, vector<16x128xf32>
    %8 = arith.index_cast %5 : i32 to index
    %c0_2 = arith.constant 0 : index
    %9 = vector.load %arg3[%8, %c0_2] : memref<16x128xf32, #tpu.memory_space<vmem>>, vector<16x128xf32>
    %10 = arith.subf %7, %9 : vector<16x128xf32>
    %11 = arith.mulf %10, %10 : vector<16x128xf32>
    %12 = vector.shape_cast %11 : vector<16x128xf32> to vector<2x8x128xf32>
    %cst_3 = arith.constant dense<0.000000e+00> : vector<8x128xf32>
    %13 = vector.multi_reduction <add>, %12, %cst_3 [0] : vector<2x8x128xf32> to vector<8x128xf32>
    %14 = arith.addf %3, %13 : vector<8x128xf32>
    %15 = math.absf %10 : vector<16x128xf32>
    %16 = vector.shape_cast %15 : vector<16x128xf32> to vector<2x8x128xf32>
    %cst_4 = arith.constant dense<0.000000e+00> : vector<8x128xf32>
    %17 = vector.multi_reduction <add>, %16, %cst_4 [0] : vector<2x8x128xf32> to vector<8x128xf32>
    %18 = arith.addf %3, %17 : vector<8x128xf32>
    %c1_i32 = arith.constant 1 : i32
    %c0_5 = arith.constant 0 : index
    %c0_6 = arith.constant 0 : index
    %c0_7 = arith.constant 0 : index
    %c0_8 = arith.constant 0 : index
    %19 = vector.load %arg4[%c0_5, %c0_6, %c0_7, %c0_8] : memref<1x2x8x128xf32, #tpu.memory_space<vmem>>, vector<1x1x8x128xf32>
    %20 = vector.shape_cast %19 : vector<1x1x8x128xf32> to vector<8x128xf32>
    %21 = arith.addf %20, %14 : vector<8x128xf32>
    %c0_9 = arith.constant 0 : index
    %c0_10 = arith.constant 0 : index
    %c0_11 = arith.constant 0 : index
    %c0_12 = arith.constant 0 : index
    %22 = vector.load %arg4[%c0_9, %c0_10, %c0_11, %c0_12] : memref<1x2x8x128xf32, #tpu.memory_space<vmem>>, vector<1x1x8x128xf32>
    %23 = vector.shape_cast %22 : vector<1x1x8x128xf32> to vector<8x128xf32>
    %24 = vector.shape_cast %21 : vector<8x128xf32> to vector<1x1x8x128xf32>
    tpu.vector_store %arg4[%c0_9, %c0_10, %c0_11, %c0_12], %24 {strides = array<i32>} : memref<1x2x8x128xf32, #tpu.memory_space<vmem>>, vector<1x1x8x128xf32>,
    %c0_13 = arith.constant 0 : index
    %c1 = arith.constant 1 : index
    %c0_14 = arith.constant 0 : index
    %c0_15 = arith.constant 0 : index
    %25 = vector.load %arg4[%c0_13, %c1, %c0_14, %c0_15] : memref<1x2x8x128xf32, #tpu.memory_space<vmem>>, vector<1x1x8x128xf32>
    %26 = vector.shape_cast %25 : vector<1x1x8x128xf32> to vector<8x128xf32>
    %27 = arith.addf %26, %18 : vector<8x128xf32>
    %c0_16 = arith.constant 0 : index
    %c1_17 = arith.constant 1 : index
    %c0_18 = arith.constant 0 : index
    %c0_19 = arith.constant 0 : index
    %28 = vector.load %arg4[%c0_16, %c1_17, %c0_18, %c0_19] : memref<1x2x8x128xf32, #tpu.memory_space<vmem>>, vector<1x1x8x128xf32>
    %29 = vector.shape_cast %28 : vector<1x1x8x128xf32> to vector<8x128xf32>
    %30 = vector.shape_cast %27 : vector<8x128xf32> to vector<1x1x8x128xf32>
    tpu.vector_store %arg4[%c0_16, %c1_17, %c0_18, %c0_19], %30 {strides = array<i32>} : memref<1x2x8x128xf32, #tpu.memory_space<vmem>>, vector<1x1x8x128xf32>,
    return
  }
  func.func @transform_0(%arg0: i32, %arg1: i32) -> (i32, i32) {
    %c1_i32 = arith.constant 1 : i32
    %0 = arith.muli %arg0, %c1_i32 : i32
    %1 = arith.addi %0, %arg1 : i32
    %c0_i32 = arith.constant 0 : i32
    %2 = arith.minsi %1, %c0_i32 : i32
    %c0_i32_0 = arith.constant 0 : i32
    %c0_i32_1 = arith.constant 0 : i32
    return %2, %c0_i32_0 : i32, i32
  }
  func.func @transform_1(%arg0: i32, %arg1: i32) -> (i32, i32) {
    %c1_i32 = arith.constant 1 : i32
    %0 = arith.muli %arg0, %c1_i32 : i32
    %1 = arith.addi %0, %arg1 : i32
    %c0_i32 = arith.constant 0 : i32
    %2 = arith.minsi %1, %c0_i32 : i32
    %c0_i32_0 = arith.constant 0 : i32
    %c0_i32_1 = arith.constant 0 : i32
    return %2, %c0_i32_0 : i32, i32
  }
  func.func @transform_2(%arg0: i32, %arg1: i32) -> (i32, i32, i32, i32) {
    %c0_i32 = arith.constant 0 : i32
    %c0_i32_0 = arith.constant 0 : i32
    %c0_i32_1 = arith.constant 0 : i32
    %c0_i32_2 = arith.constant 0 : i32
    return %arg0, %c0_i32, %c0_i32_0, %c0_i32_1 : i32, i32, i32, i32
  }
}

</mosaic_0001>

<bundles_post_ra>
// kernel: tpu_custom_call.1
= control target key start
LH: loop header
LB: loop body
LE: loop exit
PB: predicated region body
PF: predicated region fallthrough
CT: control target
= control target key end

     0   :  { %7 = vsyncpa [#allocation3], 0  ;;  %s219_s0 = inlined_call_operand.hbm [shape: f32[16,128], index: 0, kind: input, shape index: {}]   ;;  %s220_s1 = inlined_call_operand.hbm [shape: f32[16,128], index: 1, kind: input, shape index: {}]   ;;  %s221_s2 = inlined_call_operand.hbm [shape: f32[1,2,8,128], index: 2, kind: output, shape index: {}]  }
   0x1   :  { %8 = vsyncpa [#allocation6], 0 }
   0x2   :  { %9 = vsyncpa [#allocation4], 0  ;;  %s181_s9 = smov [#allocation2]  }
   0x3   :  { %s21_s10 = sshll.u32 %s181_s9, 4  ;;  %s22_s10 = int_to_ptr.vmem [resolvable:$true] %s21_s10 }
   0x4   :  { %s123_s11 = scalar_lea.vmem %s22_s10, 256  ;;  %p128_p1 = scmp.lt.s32.totalorder %s22_s10, %s22_s10 }
   0x5   :  { %p124_p0 = scmp.ne.s32.totalorder %s22_s10, %s123_s11  ;;  %p129_p2 = scmp.lt.s32.totalorder %s123_s11, %s123_s11 }
   0x7   :  { %p130_p3 = por %p129_p2, %p128_p1 }
   0x9   :  { %p131_p4 = pnand %p130_p3, %p124_p0 }
   0xb   :  { %134 = shalt.err (!%p131_p4)
}
   0xc   :  { %s182_s12 = smov 128   ;;  %s183_s13 = smov 8  }
   0xd   :  { %27 = dma.hbm_to_vmem [thread:$0]  %s219_s0, 256, %s22_s10, [#allocation3], %s182_s12, %s182_s12, %s183_s13  }
   0xe   :  { %s184_s16 = smov [#allocation5]  }
   0xf   :  { %s39_s17 = sshll.u32 %s184_s16, 4  ;;  %s40_s17 = int_to_ptr.vmem [resolvable:$true] %s39_s17 }
  0x10   :  { %s143_s18 = scalar_lea.vmem %s40_s17, 256  ;;  %p148_p6 = scmp.lt.s32.totalorder %s40_s17, %s40_s17 }
  0x11   :  { %p144_p5 = scmp.ne.s32.totalorder %s40_s17, %s143_s18  ;;  %p149_p7 = scmp.lt.s32.totalorder %s143_s18, %s143_s18 }
  0x13   :  { %p150_p8 = por %p149_p7, %p148_p6 }
  0x15   :  { %p151_p9 = pnand %p150_p8, %p144_p5 }
  0x17   :  { %154 = shalt.err (!%p151_p9)
}
  0x18   :  { %45 = dma.hbm_to_vmem [thread:$0]  %s220_s1, 256, %s40_s17, [#allocation6], %s182_s12, %s182_s12, %s183_s13  }
  0x19   :  { %175 = dma.done.wait [#allocation3], 256  }
  0x1a   :  { %176 = vsyncadd [#allocation3], 4294967040 }
  0x1b   :  { %177 = dma.done.wait [#allocation6], 256  }
  0x1c   :  { %178 = vsyncadd [#allocation6], 4294967040  ;;  %v66_v0 = vld [vmem:[#allocation2] sm:$0xff]  ;;  %v67_v1 = vld [vmem:[#allocation2 + $0x8] sm:$0xff]  ;;  %s185_s0 = smov [#allocation7]  }
  0x1d   :  { %v68_v2 = vld [vmem:[#allocation5] sm:$0xff]  ;;  %v69_v3 = vld [vmem:[#allocation5 + $0x8] sm:$0xff]  ;;  %s92_s21 = sshll.u32 %s185_s0, 4  ;;  %s93_s21 = int_to_ptr.vmem [resolvable:$true] %s92_s21 }
  0x1e   :  { %v70_v4 = vsub.f32 %v66_v0, %v68_v2  ;;  %v71_v5 = vsub.f32 %v67_v1, %v69_v3  ;;  %s155_s1 = scalar_lea.vmem %s93_s21, 256  ;;  %p160_p11 = scmp.lt.s32.totalorder %s93_s21, %s93_s21 }
  0x1f   :  { %p156_p10 = scmp.ne.s32.totalorder %s93_s21, %s155_s1  ;;  %p161_p12 = scmp.lt.s32.totalorder %s155_s1, %s155_s1 }
  0x20   :  { %v72_v6 = vmul.f32 %v70_v4, %v70_v4  ;;  %v76_v7 = vand.u32 2147483647, %v70_v4  ;;  %v73_v8 = vmul.f32 %v71_v5, %v71_v5  ;;  %v77_v9 = vand.u32 2147483647, %v71_v5 }
  0x21   :  { %p162_p13 = por %p161_p12, %p160_p11 }
  0x22   :  { %v74_v10 = vadd.f32 %v73_v8, %v72_v6  ;;  %v78_v11 = vadd.f32 %v77_v9, %v76_v7 }
  0x23   :  { %p163_p0 = pnand %p162_p13, %p156_p10 }
  0x24   :  { %82 = vst [vmem:[#allocation7] sm:$0xff] %v74_v10  ;;  %86 = vst [vmem:[#allocation7 + $0x8] sm:$0xff] %v78_v11 }
  0x25   :  { %166 = shalt.err (!%p163_p0)
}
  0x26   :  { %98 = dma.vmem_to_hbm [thread:$0]  %s93_s21, 256, %s221_s2, [#allocation4], %s182_s12, %s182_s12, %s183_s13  }
  0x27   :  { %179 = dma.done.wait [#allocation4], 256  }
  0x28   :  { %180 = vsyncadd [#allocation4], 4294967040 }
  0x29   :  { %102 = vsyncpa [#allocation3], 1 }
  0x2a   :  { %103 = vsyncpa [#allocation6], 1 }
  0x2b   :  { %104 = vsyncpa [#allocation4], 1 }

</bundles_post_ra>
